<compile_context>
chip_gen: v6e
topology: v6e:2x2x1
jax: 0.10.0
libtpu: 0.0.40
codegen_flags: <defaults>
</compile_context>

<pallas_src>
import jax
import jax.numpy as jnp
from jax.experimental import pallas as pl
from jax.experimental.pallas import tpu as pltpu

BN_EPS = 1e-5


def _round_up(x, m):
    return ((x + m - 1) // m) * m


def _vmem_limit_bytes(n_pad, f_pad, g_pad):
    """Generation-aware scoped-VMEM limit sized to the actual resident set."""
    resident = (
        2 * n_pad * n_pad            # A_hat (bf16, single-buffered resident)
        + 4 * n_pad * f_pad          # heat  (f32,  single-buffered resident)
        + 2 * g_pad * n_pad          # pool  (bf16, single-buffered resident)
        + 2 * (2 * f_pad * f_pad)    # W[l]  (bf16, double-buffered stream)
        + 2 * (4 * 8 * f_pad)        # {b,gamma,beta}[l] (f32, double-buffered)
        + 2 * (4 * n_pad * f_pad)    # hout output block
        + 2 * (4 * g_pad * f_pad)    # gh output block
        + 6 * (4 * n_pad * f_pad)    # elementwise temporaries (hw,z,h1,diff,h2,h3)
    )
    try:
        cap = int(pltpu.get_tpu_info().vmem_capacity_bytes)
    except Exception:
        cap = 64 << 20
    # Leave ~15% headroom for Mosaic internal scratch; never request below 16 MiB.
    return int(min(max(resident + (4 << 20), 16 << 20), int(cap * 0.85)))


def _encoder_fused_call(a_p, h_p, p_p, w_s, bgb_s, ac_s, aa_s,
                        *, n_layers, n_real, n_pad, f_pad, g_pad):
    mask_rows = (n_real != n_pad)
    inv_n = 1.0 / float(n_real)

    def kernel(a_ref, heat_ref, pool_ref, w_ref, bgb_ref,
               aconv_ref, aact_ref, hout_ref, gh_ref):
        layer = pl.program_id(0)

        @pl.when(layer == 0)
        def _init():
            hout_ref[...] = heat_ref[...]          # carried node-feature state
            gh_ref[...] = jnp.zeros_like(gh_ref)

        h = hout_ref[...]

        # GraphConv (norm='both'): z = A_hat @ (H @ W) + b ; bf16 MXU, f32 acc.
        hw = jnp.dot(h.astype(jnp.bfloat16), w_ref[...],
                     preferred_element_type=jnp.float32)
        bgb = bgb_ref[...]                          # rows: 0=b, 1=gamma, 2=beta
        z = jnp.dot(a_ref[...], hw.astype(jnp.bfloat16),
                    preferred_element_type=jnp.float32) + bgb[0:1, :]

        # PReLU inside GraphConv (single learnable slope, read from SMEM).
        a1 = aconv_ref[layer]
        h1 = jnp.where(z > 0, z, a1 * z)

        # BatchNorm1d over the real node rows (training-mode batch stats),
        # masked two-pass (centered) variance — robust to cancellation.
        # TODO(synk): running_mean/running_var are neither used nor updated
        # (PyTorch eval-mode BN with running stats would differ).
        if mask_rows:
            row_ids = jax.lax.broadcasted_iota(jnp.int32, h1.shape, 0)
            valid = row_ids < n_real
            h1m = jnp.where(valid, h1, 0.0)
        else:
            h1m = h1
        mean = jnp.sum(h1m, axis=0, keepdims=True) * inv_n
        diff = h1 - mean
        if mask_rows:
            diffm = jnp.where(valid, diff, 0.0)
        else:
            diffm = diff
        var = jnp.sum(diffm * diffm, axis=0, keepdims=True) * inv_n
        h2 = diff * jax.lax.rsqrt(var + BN_EPS) * bgb[1:2, :] + bgb[2:3, :]

        # Outer PReLU (self.actions[i]).
        a2 = aact_ref[layer]
        h3 = jnp.where(h2 > 0, h2, a2 * h2)

        hout_ref[...] = h3                          # carry to next layer (VMEM)
        # SumPooling, accumulated per layer directly into the resident gh block
        # (O(G*N*F), negligible next to the O(N^2*F) aggregation matmul).
        gh_ref[...] += jnp.dot(pool_ref[...], h3.astype(jnp.bfloat16),
                               preferred_element_type=jnp.float32)

    grid_spec = pltpu.PrefetchScalarGridSpec(
        num_scalar_prefetch=0,
        grid=(n_layers,),
        in_specs=[
            # Residents: constant block index across layers -> single buffer.
            pl.BlockSpec((n_pad, n_pad), lambda l: (0, 0),
                         pipeline_mode=pl.Buffered(1)),                 # A_hat (bf16)
            pl.BlockSpec((n_pad, f_pad), lambda l: (0, 0),
                         pipeline_mode=pl.Buffered(1)),                 # heat  (f32)
            pl.BlockSpec((g_pad, n_pad), lambda l: (0, 0),
                         pipeline_mode=pl.Buffered(1)),                 # pool  (bf16)
            # Per-layer streams: default double-buffering.
            pl.BlockSpec((None, f_pad, f_pad), lambda l: (l, 0, 0)),    # W[l] (bf16)
            pl.BlockSpec((None, 8, f_pad), lambda l: (l, 0, 0)),        # b/gamma/beta[l]
            pl.BlockSpec(memory_space=pltpu.MemorySpace.SMEM),          # a_conv (n,)
            pl.BlockSpec(memory_space=pltpu.MemorySpace.SMEM),          # a_act  (n,)
        ],
        out_specs=(
            pl.BlockSpec((n_pad, f_pad), lambda l: (0, 0)),             # h (carried)
            pl.BlockSpec((g_pad, f_pad), lambda l: (0, 0)),             # gh
        ),
    )

    return pl.pallas_call(
        kernel,
        out_shape=(jax.ShapeDtypeStruct((n_pad, f_pad), jnp.float32),
                   jax.ShapeDtypeStruct((g_pad, f_pad), jnp.float32)),
        grid_spec=grid_spec,
        compiler_params=pltpu.CompilerParams(
            dimension_semantics=("arbitrary",),   # layers are sequentially dependent
            vmem_limit_bytes=_vmem_limit_bytes(n_pad, f_pad, g_pad)),
    )(a_p, h_p, p_p, w_s, bgb_s, ac_s, aa_s)


def encoder_forward(a_hat, heat, pool, params):
    """Full Encoder forward (all layers fused in one pallas_call).

    Returns (h, gh) just like the PyTorch module.
    """
    # TODO(synk): self.dp = nn.Dropout(p) — evaluated in eval mode (identity).
    n_nodes, f_in = heat.shape
    n_graphs = pool.shape[0]
    f_out = params[0]["W"].shape[1]
    n_layers = len(params)

    # Lane-dense padding: feature & node dims -> mult of 128; graph dim -> mult
    # of 16 (bf16 sublane packing for the pooling matrix).  Zero padding is
    # mathematically inert:
    #  - padded A_hat rows/cols and pool cols are zero, so padded nodes never
    #    contribute to aggregation or pooling,
    #  - padded W rows/cols and b/gamma/beta entries are zero, so padded
    #    feature columns stay exactly zero,
    #  - BatchNorm statistics are masked to the real node rows in-kernel,
    #  - outputs are sliced back to the real shapes.
    # NOTE: keep f_pad at the minimal 128-multiple; do not widen to 256 on
    # v6e/v7x unless the real OUT_HIDDEN exceeds 128 (redundant FLOPs otherwise).
    f_pad = _round_up(max(f_in, f_out), 128)
    n_pad = _round_up(n_nodes, 128)
    g_pad = _round_up(n_graphs, 16)

    # Pre-cast the MXU-only operands (A_hat, W, P) to bf16 on the host: halves
    # their VMEM residency / HBM->VMEM DMA and removes the per-layer VPU cast.
    a_p = jnp.pad(a_hat.astype(jnp.float32),
                  ((0, n_pad - n_nodes), (0, n_pad - n_nodes))).astype(jnp.bfloat16)
    h_p = jnp.pad(heat.astype(jnp.float32),
                  ((0, n_pad - n_nodes), (0, f_pad - f_in)))
    p_p = jnp.pad(pool.astype(jnp.float32),
                  ((0, g_pad - n_graphs), (0, n_pad - n_nodes))).astype(jnp.bfloat16)

    # Stacked per-layer parameters (stack + pad, no per-element scatters).
    w_s = jnp.stack([
        jnp.pad(l["W"].astype(jnp.float32),
                ((0, f_pad - l["W"].shape[0]), (0, f_pad - l["W"].shape[1])))
        for l in params
    ]).astype(jnp.bfloat16)                                      # [n, f_pad, f_pad]
    bgb_s = jnp.stack([
        jnp.pad(jnp.concatenate([l["b"].reshape(1, -1),
                                 l["gamma"].reshape(1, -1),
                                 l["beta"].reshape(1, -1)], axis=0).astype(jnp.float32),
                ((0, 8 - 3), (0, f_pad - f_out)))
        for l in params
    ])                                                           # [n, 8, f_pad]
    ac_s = jnp.stack([l["a_conv"].reshape(()) for l in params]).astype(jnp.float32)
    aa_s = jnp.stack([l["a_act"].reshape(()) for l in params]).astype(jnp.float32)

    h_full, gh_full = _encoder_fused_call(
        a_p, h_p, p_p, w_s, bgb_s, ac_s, aa_s,
        n_layers=n_layers, n_real=n_nodes, n_pad=n_pad, f_pad=f_pad, g_pad=g_pad)

    return h_full[:n_nodes, :f_out], gh_full[:n_graphs, :f_out]


def make_params(key, in_hidden, out_hidden, n):
    """Deterministic parameter init matching the module's __init__ shapes."""
    params = []
    f_in = in_hidden
    for _ in range(n):
        key, kw = jax.random.split(key)
        limit = (6.0 / (f_in + out_hidden)) ** 0.5     # Xavier-uniform-ish
        w = jax.random.uniform(kw, (f_in, out_hidden), jnp.float32, -limit, limit)
        params.append(dict(
            W=w,
            b=jnp.zeros((1, out_hidden), jnp.float32),
            a_conv=jnp.full((1, 1), 0.25, jnp.float32),   # PReLU init
            gamma=jnp.ones((1, out_hidden), jnp.float32),
            beta=jnp.zeros((1, out_hidden), jnp.float32),
            a_act=jnp.full((1, 1), 0.25, jnp.float32),    # PReLU init
        ))
        f_in = out_hidden
    return params


if __name__ == "__main__":
    key = jax.random.PRNGKey(0)

    # Small synthetic batched graph: 2 graphs of 8 nodes each (16 nodes total)
    N, G = 16, 2
    IN_HIDDEN, OUT_HIDDEN, N_LAYERS, P_DROP = 8, 32, 2, 0.5

    key, ka, kx = jax.random.split(key, 3)

    # Random block-diagonal adjacency (no cross-graph edges) + self loops
    graph_id = jnp.repeat(jnp.arange(G), N // G)                       # [N]
    same_graph = (graph_id[:, None] == graph_id[None, :])
    rand_edges = jax.random.bernoulli(ka, 0.4, (N, N))
    adj = jnp.where(same_graph, rand_edges | rand_edges.T, False)
    adj = (adj | jnp.eye(N, dtype=bool)).astype(jnp.float32)

    # DGL norm='both': A_hat = D^-1/2 A D^-1/2, degrees clamped to >= 1
    deg = jnp.maximum(adj.sum(axis=1), 1.0)
    d_inv_sqrt = 1.0 / jnp.sqrt(deg)
    a_hat = (d_inv_sqrt[:, None] * adj * d_inv_sqrt[None, :]).astype(jnp.float32)

    # SumPooling membership matrix [G, N]
    pool = (graph_id[None, :] == jnp.arange(G)[:, None]).astype(jnp.float32)

    # Node features ("heat")
    heat = jax.random.normal(kx, (N, IN_HIDDEN), jnp.float32)

    params = make_params(key, IN_HIDDEN, OUT_HIDDEN, N_LAYERS)

    h, gh = encoder_forward(a_hat, heat, pool, params)
    h = jax.block_until_ready(h)
    gh = jax.block_until_ready(gh)

    assert h.shape == (N, OUT_HIDDEN) and gh.shape == (G, OUT_HIDDEN)
    assert bool(jnp.all(jnp.isfinite(h))) and bool(jnp.all(jnp.isfinite(gh)))
    print("KERNEL_OK")
</pallas_src>

<mosaic_0001>
module attributes {stable_mosaic.version = 11 : i64} {
  func.func @kernel(%arg0: i32, %arg1: memref<128x128xbf16, #tpu.memory_space<vmem>>, %arg2: memref<128x128xf32, #tpu.memory_space<vmem>>, %arg3: memref<16x128xbf16, #tpu.memory_space<vmem>>, %arg4: memref<1x128x128xbf16, #tpu.memory_space<vmem>>, %arg5: memref<1x8x128xf32, #tpu.memory_space<vmem>>, %arg6: memref<2xf32, #tpu.memory_space<smem>>, %arg7: memref<2xf32, #tpu.memory_space<smem>>, %arg8: memref<128x128xf32, #tpu.memory_space<vmem>>, %arg9: memref<16x128xf32, #tpu.memory_space<vmem>>) attributes {dimension_semantics = [#tpu.dimension_semantics<arbitrary>], iteration_bounds = array<i64: 2>, scalar_prefetch = 0 : i64, scratch_operands = 0 : i64, tpu.core_type = #tpu.core_type<tc>, window_params = [{pipeline_mode = #tpu.pipeline_mode<synchronous>, transform_indices = @transform_0, window_bounds = array<i64: 128, 128>}, {pipeline_mode = #tpu.pipeline_mode<synchronous>, transform_indices = @transform_1, window_bounds = array<i64: 128, 128>}, {pipeline_mode = #tpu.pipeline_mode<synchronous>, transform_indices = @transform_2, window_bounds = array<i64: 16, 128>}, {transform_indices = @transform_3, window_bounds = array<i64: 1, 128, 128>}, {transform_indices = @transform_4, window_bounds = array<i64: 1, 8, 128>}, {transform_indices = @transform_5, window_bounds = array<i64: 2>}, {transform_indices = @transform_6, window_bounds = array<i64: 2>}, {pipeline_mode = #tpu.pipeline_mode<synchronous>, transform_indices = @transform_7, window_bounds = array<i64: 128, 128>}, {pipeline_mode = #tpu.pipeline_mode<synchronous>, transform_indices = @transform_8, window_bounds = array<i64: 16, 128>}]} {
    %c0_i32 = arith.constant 0 : i32
    %0 = arith.cmpi eq, %arg0, %c0_i32 : i32
    %1 = arith.extui %0 : i1 to i32
    %c0_i32_0 = arith.constant 0 : i32
    %2 = arith.cmpi ne, %1, %c0_i32_0 : i32
    scf.if %2 {
      %c0_29 = arith.constant 0 : index
      %c0_30 = arith.constant 0 : index
      %66 = vector.load %arg2[%c0_29, %c0_30] : memref<128x128xf32, #tpu.memory_space<vmem>>, vector<128x128xf32>
      %c0_31 = arith.constant 0 : index
      %c0_32 = arith.constant 0 : index
      %67 = vector.load %arg8[%c0_31, %c0_32] : memref<128x128xf32, #tpu.memory_space<vmem>>, vector<128x128xf32>
      tpu.vector_store %arg8[%c0_31, %c0_32], %66 {strides = array<i32>} : memref<128x128xf32, #tpu.memory_space<vmem>>, vector<128x128xf32>,
      %cst_33 = arith.constant 0.000000e+00 : f32
      %68 = vector.broadcast %cst_33 : f32 to vector<16x128xf32>
      %c0_34 = arith.constant 0 : index
      %c0_35 = arith.constant 0 : index
      %69 = vector.load %arg9[%c0_34, %c0_35] : memref<16x128xf32, #tpu.memory_space<vmem>>, vector<16x128xf32>
      tpu.vector_store %arg9[%c0_34, %c0_35], %68 {strides = array<i32>} : memref<16x128xf32, #tpu.memory_space<vmem>>, vector<16x128xf32>,
    } else {
    }
    %c0 = arith.constant 0 : index
    %c0_1 = arith.constant 0 : index
    %3 = vector.load %arg8[%c0, %c0_1] : memref<128x128xf32, #tpu.memory_space<vmem>>, vector<128x128xf32>
    %4 = arith.truncf %3 : vector<128x128xf32> to vector<128x128xbf16>
    %c0_2 = arith.constant 0 : index
    %c0_3 = arith.constant 0 : index
    %c0_4 = arith.constant 0 : index
    %5 = vector.load %arg4[%c0_2, %c0_3, %c0_4] : memref<1x128x128xbf16, #tpu.memory_space<vmem>>, vector<1x128x128xbf16>
    %6 = vector.shape_cast %5 : vector<1x128x128xbf16> to vector<128x128xbf16>
    %cst = arith.constant dense<0.000000e+00> : vector<128x128xf32>
    %7 = tpu.matmul %4, %6, %cst {dimension_numbers = #tpu.dot_dimension_numbers<[1], [0], [0], [1], [0, 0, 1, 1], [], []>} : vector<128x128xbf16>, vector<128x128xbf16>, vector<128x128xf32> -> vector<128x128xf32>
    %c0_5 = arith.constant 0 : index
    %c0_6 = arith.constant 0 : index
    %c0_7 = arith.constant 0 : index
    %8 = vector.load %arg5[%c0_5, %c0_6, %c0_7] : memref<1x8x128xf32, #tpu.memory_space<vmem>>, vector<1x8x128xf32>
    %9 = vector.shape_cast %8 : vector<1x8x128xf32> to vector<8x128xf32>
    %c0_8 = arith.constant 0 : index
    %c0_9 = arith.constant 0 : index
    %10 = vector.load %arg1[%c0_8, %c0_9] : memref<128x128xbf16, #tpu.memory_space<vmem>>, vector<128x128xbf16>
    %11 = arith.truncf %7 : vector<128x128xf32> to vector<128x128xbf16>
    %cst_10 = arith.constant dense<0.000000e+00> : vector<128x128xf32>
    %12 = tpu.matmul %10, %11, %cst_10 {dimension_numbers = #tpu.dot_dimension_numbers<[1], [0], [0], [1], [0, 0, 1, 1], [], []>} : vector<128x128xbf16>, vector<128x128xbf16>, vector<128x128xf32> -> vector<128x128xf32>
    %13 = vector.extract_strided_slice %9 {offsets = [0, 0], sizes = [1, 128], strides = [1, 1]} : vector<8x128xf32> to vector<1x128xf32>
    %14 = vector.broadcast %13 : vector<1x128xf32> to vector<128x128xf32>
    %15 = arith.addf %12, %14 : vector<128x128xf32>
    %16 = arith.index_cast %arg0 : i32 to index
    %17 = memref.load %arg6[%16] : memref<2xf32, #tpu.memory_space<smem>>
    %cst_11 = arith.constant 0.000000e+00 : f32
    %18 = vector.broadcast %cst_11 : f32 to vector<128x128xf32>
    %19 = arith.cmpf ogt, %15, %18 : vector<128x128xf32>
    %20 = vector.broadcast %17 : f32 to vector<128x128xf32>
    %21 = arith.mulf %20, %15 : vector<128x128xf32>
    %22 = arith.select %19, %15, %21 : vector<128x128xi1>, vector<128x128xf32>
    %23 = tpu.iota {dimensions = array<i32: 0>} : vector<128x128xi32>
    %c16_i32 = arith.constant 16 : i32
    %24 = vector.broadcast %c16_i32 : i32 to vector<128x128xi32>
    %25 = arith.cmpi slt, %23, %24 : vector<128x128xi32>
    %cst_12 = arith.constant 0.000000e+00 : f32
    %26 = vector.broadcast %cst_12 : f32 to vector<128x128xf32>
    %27 = arith.select %25, %22, %26 : vector<128x128xi1>, vector<128x128xf32>
    %cst_13 = arith.constant dense<0.000000e+00> : vector<128xf32>
    %28 = vector.multi_reduction <add>, %27, %cst_13 [0] : vector<128x128xf32> to vector<128xf32>
    %29 = vector.shape_cast %28 : vector<128xf32> to vector<1x128xf32>
    %cst_14 = arith.constant 6.250000e-02 : f32
    %30 = vector.broadcast %cst_14 : f32 to vector<1x128xf32>
    %31 = arith.mulf %29, %30 : vector<1x128xf32>
    %32 = vector.broadcast %31 : vector<1x128xf32> to vector<128x128xf32>
    %33 = arith.subf %22, %32 : vector<128x128xf32>
    %cst_15 = arith.constant 0.000000e+00 : f32
    %34 = vector.broadcast %cst_15 : f32 to vector<128x128xf32>
    %35 = arith.select %25, %33, %34 : vector<128x128xi1>, vector<128x128xf32>
    %36 = arith.mulf %35, %35 : vector<128x128xf32>
    %cst_16 = arith.constant dense<0.000000e+00> : vector<128xf32>
    %37 = vector.multi_reduction <add>, %36, %cst_16 [0] : vector<128x128xf32> to vector<128xf32>
    %38 = vector.shape_cast %37 : vector<128xf32> to vector<1x128xf32>
    %cst_17 = arith.constant 6.250000e-02 : f32
    %39 = vector.broadcast %cst_17 : f32 to vector<1x128xf32>
    %40 = arith.mulf %38, %39 : vector<1x128xf32>
    %cst_18 = arith.constant 9.99999974E-6 : f32
    %41 = vector.broadcast %cst_18 : f32 to vector<1x128xf32>
    %42 = arith.addf %40, %41 : vector<1x128xf32>
    %43 = math.rsqrt %42 : vector<1x128xf32>
    %44 = vector.broadcast %43 : vector<1x128xf32> to vector<128x128xf32>
    %45 = arith.mulf %33, %44 : vector<128x128xf32>
    %46 = vector.extract_strided_slice %9 {offsets = [1, 0], sizes = [1, 128], strides = [1, 1]} : vector<8x128xf32> to vector<1x128xf32>
    %47 = vector.broadcast %46 : vector<1x128xf32> to vector<128x128xf32>
    %48 = arith.mulf %45, %47 : vector<128x128xf32>
    %49 = vector.extract_strided_slice %9 {offsets = [2, 0], sizes = [1, 128], strides = [1, 1]} : vector<8x128xf32> to vector<1x128xf32>
    %50 = vector.broadcast %49 : vector<1x128xf32> to vector<128x128xf32>
    %51 = arith.addf %48, %50 : vector<128x128xf32>
    %52 = arith.index_cast %arg0 : i32 to index
    %53 = memref.load %arg7[%52] : memref<2xf32, #tpu.memory_space<smem>>
    %cst_19 = arith.constant 0.000000e+00 : f32
    %54 = vector.broadcast %cst_19 : f32 to vector<128x128xf32>
    %55 = arith.cmpf ogt, %51, %54 : vector<128x128xf32>
    %56 = vector.broadcast %53 : f32 to vector<128x128xf32>
    %57 = arith.mulf %56, %51 : vector<128x128xf32>
    %58 = arith.select %55, %51, %57 : vector<128x128xi1>, vector<128x128xf32>
    %c0_20 = arith.constant 0 : index
    %c0_21 = arith.constant 0 : index
    %59 = vector.load %arg8[%c0_20, %c0_21] : memref<128x128xf32, #tpu.memory_space<vmem>>, vector<128x128xf32>
    tpu.vector_store %arg8[%c0_20, %c0_21], %58 {strides = array<i32>} : memref<128x128xf32, #tpu.memory_space<vmem>>, vector<128x128xf32>,
    %c0_22 = arith.constant 0 : index
    %c0_23 = arith.constant 0 : index
    %60 = vector.load %arg9[%c0_22, %c0_23] : memref<16x128xf32, #tpu.memory_space<vmem>>, vector<16x128xf32>
    %c0_24 = arith.constant 0 : index
    %c0_25 = arith.constant 0 : index
    %61 = vector.load %arg3[%c0_24, %c0_25] : memref<16x128xbf16, #tpu.memory_space<vmem>>, vector<16x128xbf16>
    %62 = arith.truncf %58 : vector<128x128xf32> to vector<128x128xbf16>
    %cst_26 = arith.constant dense<0.000000e+00> : vector<16x128xf32>
    %63 = tpu.matmul %61, %62, %cst_26 {dimension_numbers = #tpu.dot_dimension_numbers<[1], [0], [0], [1], [0, 0, 1, 1], [], []>} : vector<16x128xbf16>, vector<128x128xbf16>, vector<16x128xf32> -> vector<16x128xf32>
    %64 = arith.addf %60, %63 : vector<16x128xf32>
    %c0_27 = arith.constant 0 : index
    %c0_28 = arith.constant 0 : index
    %65 = vector.load %arg9[%c0_27, %c0_28] : memref<16x128xf32, #tpu.memory_space<vmem>>, vector<16x128xf32>
    tpu.vector_store %arg9[%c0_27, %c0_28], %64 {strides = array<i32>} : memref<16x128xf32, #tpu.memory_space<vmem>>, vector<16x128xf32>,
    return
  }
  func.func @transform_0(%arg0: i32) -> (i32, i32) {
    %c0_i32 = arith.constant 0 : i32
    %c0_i32_0 = arith.constant 0 : i32
    %c0_i32_1 = arith.constant 0 : i32
    return %c0_i32, %c0_i32_0 : i32, i32
  }
  func.func @transform_1(%arg0: i32) -> (i32, i32) {
    %c0_i32 = arith.constant 0 : i32
    %c0_i32_0 = arith.constant 0 : i32
    %c0_i32_1 = arith.constant 0 : i32
    return %c0_i32, %c0_i32_0 : i32, i32
  }
  func.func @transform_2(%arg0: i32) -> (i32, i32) {
    %c0_i32 = arith.constant 0 : i32
    %c0_i32_0 = arith.constant 0 : i32
    %c0_i32_1 = arith.constant 0 : i32
    return %c0_i32, %c0_i32_0 : i32, i32
  }
  func.func @transform_3(%arg0: i32) -> (i32, i32, i32) {
    %c0_i32 = arith.constant 0 : i32
    %c0_i32_0 = arith.constant 0 : i32
    %c0_i32_1 = arith.constant 0 : i32
    return %arg0, %c0_i32, %c0_i32_0 : i32, i32, i32
  }
  func.func @transform_4(%arg0: i32) -> (i32, i32, i32) {
    %c0_i32 = arith.constant 0 : i32
    %c0_i32_0 = arith.constant 0 : i32
    %c0_i32_1 = arith.constant 0 : i32
    return %arg0, %c0_i32, %c0_i32_0 : i32, i32, i32
  }
  func.func @transform_5(%arg0: i32) -> i32 {
    %c0_i32 = arith.constant 0 : i32
    %c0_i32_0 = arith.constant 0 : i32
    return %c0_i32 : i32
  }
  func.func @transform_6(%arg0: i32) -> i32 {
    %c0_i32 = arith.constant 0 : i32
    %c0_i32_0 = arith.constant 0 : i32
    return %c0_i32 : i32
  }
  func.func @transform_7(%arg0: i32) -> (i32, i32) {
    %c0_i32 = arith.constant 0 : i32
    %c0_i32_0 = arith.constant 0 : i32
    %c0_i32_1 = arith.constant 0 : i32
    return %c0_i32, %c0_i32_0 : i32, i32
  }
  func.func @transform_8(%arg0: i32) -> (i32, i32) {
    %c0_i32 = arith.constant 0 : i32
    %c0_i32_0 = arith.constant 0 : i32
    %c0_i32_1 = arith.constant 0 : i32
    return %c0_i32, %c0_i32_0 : i32, i32
  }
}

</mosaic_0001>

<bundles_post_ra>
// kernel: tpu_custom_call.1
= control target key start
LH: loop header
LB: loop body
LE: loop exit
PB: predicated region body
PF: predicated region fallthrough
CT: control target
= control target key end

     0   :  { %s2446_s0 = inlined_call_operand.hbm [shape: bf16[128,128], index: 0, kind: input, shape index: {}]   ;;  %s2447_s1 = inlined_call_operand.hbm [shape: f32[128,128], index: 1, kind: input, shape index: {}]   ;;  %s2448_s2 = inlined_call_operand.hbm [shape: bf16[16,128], index: 2, kind: input, shape index: {}]   ;;  %s2449_s3 = inlined_call_operand.hbm [shape: bf16[2,128,128], index: 3, kind: input, shape index: {}]   ;;  %s2450_s4 = inlined_call_operand.hbm [shape: f32[2,8,128], index: 4, kind: input, shape index: {}]   ;;  %s2451_s5 = inlined_call_operand.vmem [shape: f32[2], index: 5, kind: input, shape index: {}]   ;;  %s2452_s6 = inlined_call_operand.vmem [shape: f32[2], index: 6, kind: input, shape index: {}]   ;;  %s2453_s7 = inlined_call_operand.hbm [shape: f32[128,128], index: 7, kind: output, shape index: {0}]   ;;  %s2454_s8 = inlined_call_operand.hbm [shape: f32[16,128], index: 8, kind: output, shape index: {1}]  }
   0x1   :  { %2464 = sst [smem:[#allocation25_spill]] %s2447_s1 }
   0x2   :  { %14 = vsyncpa [#allocation3], 0 }
   0x3   :  { %15 = vsyncpa [#allocation7], 0 }
   0x4   :  { %16 = vsyncpa [#allocation10], 0 }
   0x5   :  { %18 = vsyncpa [#allocation10 + $0x1], 0 }
   0x6   :  { %19 = vsyncpa [#allocation5], 0 }
   0x7   :  { %20 = vsyncpa [#allocation14], 0 }
   0x8   :  { %21 = vsyncpa [#allocation4], 0 }
   0x9   :  { %22 = vsyncpa [#allocation17], 0  ;;  %s1991_s27 = smov 0   ;;  %s1993_s28 = smov 0  }
   0xa   :  { %s1995_s29 = smov 0   ;;  %s1997_s30 = smov 0  }
   0xb LB: > { %s1928_s9 = smov [#allocation6]   ;;  %s2012_s11 = sadd.s32 4294967295, %s1926_s30   ;;  %s1926_s30 = sphi %s1997_s30, %s2490_s30   ;;  %s1922_s29 = sphi %s1995_s29, %s2489_s29   ;;  %s1918_s28 = sphi %s1993_s28, %s2488_s28   ;;  %s1914_s27 = sphi %s1991_s27, %s2487_s27  }
   0xc   : > { %s257_s10 = sshll.u32 %s1928_s9, 4  ;;  %p1349_p0 = scmp.ge.s32.totalorder %s1926_s30, 1  ;;  %s258_s10 = int_to_ptr.vmem [resolvable:$true] %s257_s10 }
   0xd   : > { %p2456_p1 = scmp.eq.s32.totalorder %s2012_s11, 0  ;;  %p232_p2 = scmp.lt.s32.totalorder %s1926_s30, 3 }
   0xe   : > { %s2031_s14 = sadd.s32 1, %s1926_s30   ;;  %s1667_s16 = scalar_lea.vmem %s258_s10, 2048 }
   0xf   : > { %p2018_p4 = pnand %p1349_p0, %p232_p2  ;;  %p1668_p8 = scmp.ne.s32.totalorder %s258_s10, %s1667_s16 }
  0x10   : > { %p1675_p11 = scmp.lt.s32.totalorder %s258_s10, %s258_s10  ;;  %p1676_p12 = scmp.lt.s32.totalorder %s1667_s16, %s1667_s16 }
  0x11   : > { %s2465_s12 = scalar_select %p2018_p4, 1, 0 }
  0x12   : > { %p1551_p5 = pneg %p2018_p4  ;;  %p1677_p13 = por %p1676_p12, %p1675_p11 }
  0x14   : > { %p2026_p6 = pnand %p1551_p5, %p2456_p1 }
  0x16   : > { %s2466_s13 = scalar_select %p2026_p6, 1, 0 }
  0x17   : > { %p2035_p7 = pneg %p2026_p6 }
  0x19   : > { %p1670_p9 = pnand %p1668_p8, %p2035_p7 }
  0x1b   : > { %p1671_p10 = pneg %p1670_p9 }
  0x1d   : > { %p1678_p0 = pnand %p1677_p13, %p1671_p10 }
  0x1f   : > { %1681 = shalt.err (!%p1678_p0)
}
  0x20   : > { %s1929_s17 = smov 128   ;;  %s1930_s18 = smov 8  }
  0x21   : > { %s2468_s1 = sld [smem:[#allocation25_spill]]  ;;  %s95_s21 = ssub.s32 %s1926_s30, %s2031_s14 }
  0x22   : > { %s98_s22 = sadd.s32 1, %s1922_s29  ;;  %p96_p2 = scmp.eq.s32.totalorder %s95_s21, 0 }
  0x23   : > { %p105_p5 = scmp.ne.s32.totalorder %s1922_s29, %s1918_s28  ;;  %p106_p8 = scmp.eq.s32.totalorder %s1926_s30, 0 }
  0x24   : > { %p111_p9 = scmp.ne.s32.totalorder %s1918_s28, %s1914_s27  ;;  %p1579_p12 = scmp.lt.s32.totalorder %s1926_s30, 2 }
  0x25   : > { %s2055_s23 = scalar_select %p96_p2, %s1922_s29, %s98_s22  }
  0x26   : > { %p107_p10 = por %p106_p8, %p105_p5  ;;  %p2059_p11 = por %p2456_p1, %p111_p9 }
  0x27   : > { %1557 = dma.hbm_to_vmem [thread:$0]  (!%p2026_p6), %s2468_s1, 2048, %s258_s10, [#allocation7], %s1929_s17, %s1929_s17, %s1930_s18  }
  0x28   : > { %s2469_s24 = scalar_select %p2059_p11, 1, 0 }
  0x29   : > { %s306_s25 = sand.u32 1, %s1926_s30   ;;  %s2455_s26 = sand.u32 1, %s1922_s29  }
  0x2a   : > { %s1356_s9 = sshll.u32 %s2455_s26, 6  ;;  %s1393_s10 = sshll.u32 %s1926_s30, 10 }
  0x2b   : > { %s2072_s18 = scalar_lea.hbm %s2449_s3, %s1393_s10  ;;  %s310_s27 = scalar_lea.vmem [#allocation9], %s1356_s9 }
  0x2c   : > { %s317_s19 = sshll.u32 %s310_s27, 4  ;;  %p2074_p13 = pnand %p1579_p12, %p107_p10  ;;  %s2078_s19 = int_to_ptr.vmem [resolvable:$true] %s317_s19 }
  0x2d   : > { %s1931_s21 = smov [#allocation2]   ;;  %s2082_s26 = scalar_lea.sflag [#allocation10], %s306_s25 }
  0x2e   : > { %s2470_s20 = scalar_select %p2074_p13, 1, 0 }
  0x2f   : > { %s2080_s22 = sshll.u32 %s1931_s21, 4  ;;  %s1682_s10 = scalar_lea.hbm %s2072_s18, 1024  ;;  %s245_s22 = int_to_ptr.vmem [resolvable:$true] %s2080_s22 }
  0x30   : > { %p1683_p0 = scmp.ne.s32.totalorder %s2072_s18, %s1682_s10  ;;  %p2461_p2 = pneg %p2074_p13 }
  0x31   : > { %s1687_s17 = scalar_lea.hbm %s2449_s3, 2048  ;;  %p1688_p9 = scmp.lt.s32.totalorder %s2072_s18, %s2449_s3 }
  0x32   : > { %p1685_p5 = pnand %p2461_p2, %p1683_p0  ;;  %p1689_p10 = scmp.lt.s32.totalorder %s1687_s17, %s1682_s10 }
  0x34   : > { %p1686_p8 = pneg %p1685_p5  ;;  %p1690_p12 = por %p1689_p10, %p1688_p9 }
  0x36   : > { %p1691_p3 = pnand %p1690_p12, %p1686_p8 }
  0x38   : > { %1694 = shalt.err (!%p1691_p3)
}
  0x39   : > { %s1695_s25 = scalar_lea.vmem %s2078_s19, 1024  ;;  %s1932_s21 = smov [#allocation9]  }
  0x3a   : > { %p1696_p1 = scmp.ne.s32.totalorder %s2078_s19, %s1695_s25  ;;  %s1700_s9 = sshll.u32 %s1932_s21, 4  ;;  %s1701_s9 = int_to_ptr.vmem [resolvable:$false] %s1700_s9 }
  0x3b   : > { %s1702_s16 = scalar_lea.vmem %s1701_s9, 2048  ;;  %p1703_p11 = scmp.lt.s32.totalorder %s2078_s19, %s1701_s9 }
  0x3c   : > { %p1698_p0 = pnand %p1696_p1, %p2461_p2  ;;  %p1704_p4 = scmp.lt.s32.totalorder %s1702_s16, %s1695_s25 }
  0x3e   : > { %p1699_p5 = pneg %p1698_p0  ;;  %p1705_p6 = por %p1704_p4, %p1703_p11 }
  0x40   : > { %p1706_p9 = pnand %p1705_p6, %p1699_p5 }
  0x42   : > { %1709 = shalt.err (!%p1706_p9)
}
  0x43   : > { %s1933_s1 = smov 64   ;;  %s1934_s10 = smov 4  }
  0x44   : > { %1570 = dma.hbm_to_vmem [thread:$0]  (!%p2074_p13), %s2072_s18, 1024, %s2078_s19, %s2082_s26, %s1933_s1, %s1933_s1, %s1934_s10  }
  0x45   : > { %s1721_s17 = scalar_lea.vmem %s245_s22, 1024  ;;  %p1729_p6 = scmp.lt.s32.totalorder %s245_s22, %s245_s22 }
  0x46   : > { %p1722_p1 = scmp.ne.s32.totalorder %s245_s22, %s1721_s17  ;;  %p1730_p11 = scmp.lt.s32.totalorder %s1721_s17, %s1721_s17 }
  0x48   : > { %p1724_p3 = pnand %p1722_p1, %p2035_p7  ;;  %p1731_p8 = por %p1730_p11, %p1729_p6 }
  0x4a   : > { %p1725_p4 = pneg %p1724_p3 }
  0x4c   : > { %p1732_p10 = pnand %p1731_p8, %p1725_p4 }
  0x4e   : > { %1735 = shalt.err (!%p1732_p10)
}
  0x4f   : > { %p2471_p12 = scmp.ne.s32.totalorder %s2466_s13, 0  ;;  %s1935_s18 = smov [#allocation8]  }
  0x50   : > { %s270_s19 = sshll.u32 %s1935_s18, 4  ;;  %s284_s16 = sshll.u32 %s2451_s5, 4  ;;  %s271_s19 = int_to_ptr.vmem [resolvable:$true] %s270_s19  ;;  %s285_s16 = int_to_ptr.vmem [resolvable:$true] %s284_s16 }
  0x51   : > { %1554 = dma.hbm_to_vmem [thread:$0]  (!%p2471_p12), %s2446_s0, 1024, %s245_s22, [#allocation3], %s1933_s1, %s1933_s1, %s1934_s10  }
  0x52   : > { %s1747_s17 = scalar_lea.vmem %s271_s19, 128  ;;  %p1755_p1 = scmp.lt.s32.totalorder %s271_s19, %s271_s19 }
  0x53   : > { %p1748_p0 = scmp.ne.s32.totalorder %s271_s19, %s1747_s17  ;;  %p1756_p3 = scmp.lt.s32.totalorder %s1747_s17, %s1747_s17 }
  0x55   : > { %p1750_p5 = pnand %p1748_p0, %p2035_p7  ;;  %p1757_p4 = por %p1756_p3, %p1755_p1 }
  0x57   : > { %p1751_p9 = pneg %p1750_p5 }
  0x59   : > { %p1758_p6 = pnand %p1757_p4, %p1751_p9 }
  0x5b   : > { %1761 = shalt.err (!%p1758_p6)
}
  0x5c   : > { %1560 = dma.hbm_to_vmem [thread:$0]  (!%p2471_p12), %s2448_s2, 128, %s271_s19, [#allocation7], %s1933_s1, %s1933_s1, %s1934_s10  }
  0x5d   : > { %s295_s21 = sshll.u32 %s2452_s6, 4  ;;  %s1762_s9 = scalar_lea.vmem %s285_s16, 16  ;;  %s296_s21 = int_to_ptr.vmem [resolvable:$true] %s295_s21 }
  0x5e   : > { %p1763_p11 = scmp.ne.s32.totalorder %s285_s16, %s1762_s9  ;;  %p1770_p0 = scmp.lt.s32.totalorder %s285_s16, %s285_s16 }
  0x5f   : > { %p1771_p5 = scmp.lt.s32.totalorder %s1762_s9, %s1762_s9 }
  0x60   : > { %p1765_p8 = pnand %p1763_p11, %p2035_p7 }
  0x61   : > { %p1772_p9 = por %p1771_p5, %p1770_p0 }
  0x62   : > { %p1766_p10 = pneg %p1765_p8 }
  0x64   : > { %p1773_p1 = pnand %p1772_p9, %p1766_p10 }
  0x66   : > { %1776 = shalt.err (!%p1773_p1)
}
  0x67   : > { %s1936_s17 = smov [#allocation12]   ;;  %s1777_s1 = scalar_lea.vmem %s296_s21, 16 }
  0x68   : > { %1563 = dma.vmem_to_smem (!%p2471_p12), %s285_s16, 16, %s1936_s17, [#allocation5]  }
  0x69   : > { %p1778_p3 = scmp.ne.s32.totalorder %s296_s21, %s1777_s1  ;;  %p1785_p2 = scmp.lt.s32.totalorder %s296_s21, %s296_s21 }
  0x6a   : > { %p1786_p13 = scmp.lt.s32.totalorder %s1777_s1, %s1777_s1 }
  0x6b   : > { %p1780_p4 = pnand %p1778_p3, %p2035_p7 }
  0x6c   : > { %p1787_p11 = por %p1786_p13, %p1785_p2 }
  0x6d   : > { %p1781_p6 = pneg %p1780_p4 }
  0x6f   : > { %p1788_p8 = pnand %p1787_p11, %p1781_p6 }
  0x71   : > { %1791 = shalt.err (!%p1788_p8)
}
  0x72   : > { %s1937_s10 = smov [#allocation13]   ;;  %s2472_s19 = sand.u32 1, %s1922_s29  }
  0x73   : > { %1566 = dma.vmem_to_smem (!%p2471_p12), %s296_s21, 16, %s1937_s10, [#allocation14]  }
  0x74   : > { %s1359_s16 = sshll.u32 %s2472_s19, 3  ;;  %s1360_s22 = sshll.u32 %s1926_s30, 7 }
  0x75   : > { %s336_s15 = scalar_lea.hbm %s2450_s4, %s1360_s22  ;;  %s331_s18 = scalar_lea.vmem [#allocation11], %s1359_s16 }
  0x76   : > { %s338_s9 = sshll.u32 %s331_s18, 4  ;;  %s1792_s17 = scalar_lea.hbm %s336_s15, 128  ;;  %s339_s9 = int_to_ptr.vmem [resolvable:$true] %s338_s9 }
  0x77   : > { %p1793_p7 = scmp.ne.s32.totalorder %s336_s15, %s1792_s17  ;;  %p2473_p13 = scmp.ne.s32.totalorder %s2470_s20, 0 }
  0x78   : > { %s1797_s21 = scalar_lea.hbm %s2450_s4, 256  ;;  %p1798_p12 = scmp.lt.s32.totalorder %s336_s15, %s2450_s4 }
  0x79   : > { %p2474_p2 = pneg %p2473_p13  ;;  %p1799_p5 = scmp.lt.s32.totalorder %s1797_s21, %s1792_s17 }
  0x7b   : > { %p1795_p10 = pnand %p1793_p7, %p2474_p2  ;;  %p1800_p9 = por %p1799_p5, %p1798_p12 }
  0x7d   : > { %p1796_p0 = pneg %p1795_p10 }
  0x7f   : > { %p1801_p1 = pnand %p1800_p9, %p1796_p0 }
  0x81   : > { %1804 = shalt.err (!%p1801_p1)
}
  0x82   : > { %s1805_s30 = scalar_lea.vmem %s339_s9, 128  ;;  %p2475_p4 = pmov %p2474_p2 }
  0x83   : > { %p1806_p3 = scmp.ne.s32.totalorder %s339_s9, %s1805_s30  ;;  %s1938_s16 = smov [#allocation11]  }
  0x84   : > { %s1810_s22 = sshll.u32 %s1938_s16, 4  ;;  %s1811_s22 = int_to_ptr.vmem [resolvable:$false] %s1810_s22 }
  0x85   : > { %p1808_p6 = pnand %p1806_p3, %p2475_p4  ;;  %s1812_s27 = scalar_lea.vmem %s1811_s22, 256 }
  0x86   : > { %p1813_p8 = scmp.lt.s32.totalorder %s339_s9, %s1811_s22  ;;  %p1814_p7 = scmp.lt.s32.totalorder %s1812_s27, %s1805_s30 }
  0x87   : > { %p1809_p11 = pneg %p1808_p6 }
  0x88   : > { %p1815_p2 = por %p1814_p7, %p1813_p8 }
  0x8a   : > { %p1816_p10 = pnand %p1815_p2, %p1809_p11 }
  0x8c   : > { %1819 = shalt.err (!%p1816_p10)
}
  0x8d   : > { %1573 = dma.hbm_to_vmem [thread:$0]  (!%p2473_p13), %s336_s15, 128, %s339_s9, %s2082_s26  }
  0x8e   : > { %p2476_p0 = scmp.ne.s32.totalorder %s2465_s12, 0 }
  0x8f   : > { %p2477_p12 = scmp.eq.s32.totalorder (!%p2476_p0), %s2012_s11, 0 }
  0x90   : > { %347 = sbr.rel (%p2476_p0) target bundleno = 984 (0x3d8), region = 48 }
  0x95   : > { %1885 = dma.done.wait (%p2477_p12), [#allocation3], 1024   ;;  %p2478_p5 = pmov %p2477_p12 }
  0x97   : > { %1887 = vsyncadd (%p2478_p5), [#allocation3], 4294966272  ;;  %p2479_p9 = pmov %p2478_p5 }
  0x98   : > { %p2480_p1 = pmov %p2478_p5 }
  0x99   : > { %1889 = dma.done.wait (%p2479_p9), [#allocation7], 2176  }
  0x9a   : > { %1891 = vsyncadd (%p2480_p1), [#allocation7], 4294965120  ;;  %s361_s20 = sand.u32 1, %s2012_s11   ;;  %s363_s26 = sand.u32 1, %s1918_s28  }
  0x9b   : > { %s1365_s25 = sshll.u32 %s363_s26, 6  ;;  %s362_s12 = scalar_lea.sflag [#allocation10], %s361_s20 }
  0x9c   : > { %s2180_s15 = scalar_lea.vmem [#allocation9], %s1365_s25  ;;  %p2481_p13 = scmp.ne.s32.totalorder %s2469_s24, 0 }
  0x9e   : > { %1893 = dma.done.wait (%p2481_p13), %s362_s12, 1152  }
  0x9f   : > { %1895 = vsyncadd (%p2481_p13), %s362_s12, 4294966144  ;;  %s2186_s18 = sshll.u32 %s363_s26, 3  ;;  %p2482_p3 = pmov %p2480_p1 }
  0xa0   : > { %s374_s9 = scalar_lea.vmem [#allocation11], %s2186_s18 }
  0xa1   : > { %1897 = dma.done.wait (%p2482_p3), [#allocation5], 16   ;;  %p2483_p4 = pmov %p2480_p1 }
  0xa2   : > { %p2484_p6 = pmov %p2480_p1 }
  0xa3   : > { %1899 = vsyncadd (%p2483_p4), [#allocation5], 4294967280 }
  0xa4   : > { %1901 = dma.done.wait (%p2484_p6), [#allocation14], 16   ;;  %p2485_p11 = pmov %p2480_p1 }
  0xa6   : > { %1903 = vsyncadd (%p2485_p11), [#allocation14], 4294967280 }
  0xa7   : > { %387 = sfence }
  0xa8   : > { %p2486_p8 = scmp.ne.s32.totalorder %s2012_s11, 0 }
  0xaa   : > { %420 = sbr.rel (%p2486_p8) target bundleno = 185 (0xb9), region = 80 }
  0xaf   : > { %v421_v0 = vld [vmem:[#allocation6] sm:$0xff]  ;;  %v422_v1 = vld [vmem:[#allocation6 + $0x8] sm:$0xff]  ;;  %v423_v2 = vld [vmem:[#allocation6 + $0x10] sm:$0xff]  ;;  %v1939_v6 = vmov 0.0  }
  0xb0   : > { %437 = vst [vmem:[#allocation15] sm:$0xff] %v421_v0  ;;  %438 = vst [vmem:[#allocation15 + $0x8] sm:$0xff] %v422_v1  ;;  %v424_v3 = vld [vmem:[#allocation6 + $0x18] sm:$0xff]  ;;  %v425_v4 = vld [vmem:[#allocation6 + $0x20] sm:$0xff] }
  0xb1   : > { %439 = vst [vmem:[#allocation15 + $0x10] sm:$0xff] %v423_v2  ;;  %v426_v5 = vld [vmem:[#allocation6 + $0x28] sm:$0xff]  ;;  %453 = vst [vmem:[#allocation16] sm:$0xff] %v1939_v6  ;;  %v427_v7 = vld [vmem:[#allocation6 + $0x30] sm:$0xff] }
  0xb2   : > { %454 = vst [vmem:[#allocation16 + $0x8] sm:$0xff] %v1939_v6  ;;  %440 = vst [vmem:[#allocation15 + $0x18] sm:$0xff] %v424_v3  ;;  %v428_v8 = vld [vmem:[#allocation6 + $0x38] sm:$0xff]  ;;  %v429_v9 = vld [vmem:[#allocation6 + $0x40] sm:$0xff] }
  0xb3   : > { %441 = vst [vmem:[#allocation15 + $0x20] sm:$0xff] %v425_v4  ;;  %442 = vst [vmem:[#allocation15 + $0x28] sm:$0xff] %v426_v5  ;;  %v430_v10 = vld [vmem:[#allocation6 + $0x48] sm:$0xff]  ;;  %v431_v11 = vld [vmem:[#allocation6 + $0x50] sm:$0xff] }
  0xb4   : > { %443 = vst [vmem:[#allocation15 + $0x30] sm:$0xff] %v427_v7  ;;  %444 = vst [vmem:[#allocation15 + $0x38] sm:$0xff] %v428_v8  ;;  %v432_v12 = vld [vmem:[#allocation6 + $0x58] sm:$0xff]  ;;  %v433_v13 = vld [vmem:[#allocation6 + $0x60] sm:$0xff] }
  0xb5   : > { %445 = vst [vmem:[#allocation15 + $0x40] sm:$0xff] %v429_v9  ;;  %446 = vst [vmem:[#allocation15 + $0x48] sm:$0xff] %v430_v10  ;;  %v434_v14 = vld [vmem:[#allocation6 + $0x68] sm:$0xff]  ;;  %v435_v15 = vld [vmem:[#allocation6 + $0x70] sm:$0xff] }
  0xb6   : > { %447 = vst [vmem:[#allocation15 + $0x50] sm:$0xff] %v431_v11  ;;  %448 = vst [vmem:[#allocation15 + $0x58] sm:$0xff] %v432_v12  ;;  %v436_v16 = vld [vmem:[#allocation6 + $0x78] sm:$0xff] }
  0xb7   : > { %449 = vst [vmem:[#allocation15 + $0x60] sm:$0xff] %v433_v13  ;;  %450 = vst [vmem:[#allocation15 + $0x68] sm:$0xff] %v434_v14 }
  0xb8   : > { %451 = vst [vmem:[#allocation15 + $0x70] sm:$0xff] %v435_v15  ;;  %452 = vst [vmem:[#allocation15 + $0x78] sm:$0xff] %v436_v16 }
  0xb9 PF: > { %v1637_v17 = vld [vmem:[%s2180_s15 + $0x38] sm:$0xff]   ;;  %v1638_v18 = vld [vmem:[%s2180_s15 + $0x30] sm:$0xff]   ;;  %v1639_v19 = vld [vmem:[%s2180_s15 + $0x28] sm:$0xff]   ;;  %vm1941_vm0 = vmmov 0   ;;  %s814_s24 = sld [smem:[#allocation12 + %s2012_s11]]  ;;  %p1585_p7 = scmp.eq.s32.totalorder %s2012_s11, 1 }
  0xba   : > { %1435 = vmatprep.subr.bf16.mxu0 %v1637_v17  ;;  %v1640_v20 = vld [vmem:[%s2180_s15 + $0x20] sm:$0xff]   ;;  %v455_v21 = vld [vmem:[#allocation15] sm:$0xff]  ;;  %v456_v22 = vld [vmem:[#allocation15 + $0x8] sm:$0xff]  ;;  %s1063_s17 = sld [smem:[#allocation13 + %s2012_s11]]  ;;  %s1942_s13 = smov [#allocation15]  }
  0xbb   : > { %1436 = vmatpush3.bf16.msra.mxu0 %v1637_v17  ;;  %v471_v23 = vpack.c.bf16 %v456_v22, %v455_v21  ;;  %v1641_v24 = vld [vmem:[%s2180_s15 + $0x18] sm:$0xff]   ;;  %v1642_v25 = vld [vmem:[%s2180_s15 + $0x10] sm:$0xff]   ;;  %v1643_v26 = vld [vmem:[%s2180_s15 + $0x8] sm:$0xff]   ;;  %v1940_v17 = vmov 0.0   ;;  %s1198_s1 = sshll.u32 %s1942_s13, 4  ;;  %s1199_s1 = int_to_ptr.vmem [resolvable:$true] %s1198_s1 }
  0xbc   : > { %1437 = vmatprep.subr.bf16.mxu0 %v1638_v18  ;;  %v1644_v27 = vld [vmem:[%s2180_s15] sm:$0xff]   ;;  %v458_v29 = vld [vmem:[#allocation15 + $0x18] sm:$0xff]  ;;  %v459_v30 = vld [vmem:[#allocation15 + $0x20] sm:$0xff]  ;;  %s1820_s21 = scalar_lea.vmem %s1199_s1, 2048  ;;  %p1827_p12 = scmp.lt.s32.totalorder %s1199_s1, %s1199_s1 }
  0xbd   : > { %1451 = vmatprep.mubr.bf16.mxu0 %v471_v23  ;;  %v457_v28 = vld [vmem:[#allocation15 + $0x10] sm:$0xff]  ;;  %v460_v31 = vld [vmem:[#allocation15 + $0x28] sm:$0xff]  ;;  %v462_v35 = vld [vmem:[#allocation15 + $0x38] sm:$0xff]  ;;  %p1821_p2 = scmp.ne.s32.totalorder %s1199_s1, %s1820_s21  ;;  %p1828_p5 = scmp.lt.s32.totalorder %s1820_s21, %s1820_s21 }
  0xbe   : > { %v472_v32 = vpack.c.bf16 %v458_v29, %v457_v28  ;;  %v473_v33 = vpack.c.bf16 %v460_v31, %v459_v30  ;;  %v461_v34 = vld [vmem:[#allocation15 + $0x30] sm:$0xff]  ;;  %v463_v36 = vld [vmem:[#allocation15 + $0x40] sm:$0xff]  ;;  %v464_v37 = vld [vmem:[#allocation15 + $0x48] sm:$0xff] }
  0xbf   : > { %1438 = vmatpush3.bf16.msra.mxu0 %v1638_v18  ;;  %v474_v38 = vpack.c.bf16 %v462_v35, %v461_v34  ;;  %v475_v39 = vpack.c.bf16 %v464_v37, %v463_v36  ;;  %v465_v40 = vld [vmem:[#allocation15 + $0x50] sm:$0xff]  ;;  %v466_v41 = vld [vmem:[#allocation15 + $0x58] sm:$0xff]  ;;  %v467_v42 = vld [vmem:[#allocation15 + $0x60] sm:$0xff]  ;;  %v665_v18 = vlaneseq  ;;  %p1822_p10 = pnand %p1821_p2, %p1585_p7  ;;  %p1829_p9 = por %p1828_p5, %p1827_p12 }
  0xc0   : > { %1439 = vmatprep.subr.bf16.mxu0 %v1639_v19  ;;  %v468_v43 = vld [vmem:[#allocation15 + $0x68] sm:$0xff]  ;;  %v476_v44 = vpack.c.bf16 %v466_v41, %v465_v40  ;;  %v469_v46 = vld [vmem:[#allocation15 + $0x70] sm:$0xff]  ;;  %v470_v47 = vld [vmem:[#allocation15 + $0x78] sm:$0xff] }
  0xc1   : > { %v477_v45 = vpack.c.bf16 %v468_v43, %v467_v42  ;;  %v478_v48 = vpack.c.bf16 %v470_v47, %v469_v46  ;;  %v1645_v49 = vld [vmem:[#allocation2] sm:$0xff]   ;;  %v1646_v10 = vld [vmem:[#allocation2 + $0x8] sm:$0xff]   ;;  %v1647_v11 = vld [vmem:[#allocation2 + $0x10] sm:$0xff]   ;;  %p1823_p0 = pneg %p1822_p10 }
  0xc2   : > { %1483 = vmatprep.mubr.bf16.mxu1 %v1645_v49  ;;  %v1648_v12 = vld [vmem:[#allocation2 + $0x18] sm:$0xff]   ;;  %v1649_v13 = vld [vmem:[#allocation2 + $0x20] sm:$0xff]   ;;  %v1650_v14 = vld [vmem:[#allocation2 + $0x28] sm:$0xff]  }
  0xc3   : > { %1440 = vmatpush3.bf16.msra.mxu0 %v1639_v19  ;;  %v1651_v15 = vld [vmem:[#allocation2 + $0x30] sm:$0xff]   ;;  %v1652_v16 = vld [vmem:[#allocation2 + $0x38] sm:$0xff]   ;;  %v2209_v19 = vshrl.u32 %v665_v18, 7  ;;  %p1830_p1 = pnand %p1829_p9, %p1823_p0 }
  0xc4   : > { %1441 = vmatprep.subr.bf16.mxu0 %v1640_v20  ;;  %v2215_v21 = vld [vmem:[%s374_s9] sm:$0xff] }
  0xc7   : > { %1442 = vmatpush3.bf16.msra.mxu0 %v1640_v20  ;;  %v667_v20 = vsub.s32 0, %v2209_v19 }
  0xc8   : > { %1443 = vmatprep.subr.bf16.mxu0 %v1641_v24 }
  0xc9   : > { %v2218_v22 = vrot.slane %v2215_v21, %v667_v20  ;;  %v2262_v20 = vstv %s1063_s17 }
  0xcb   : > { %1444 = vmatpush3.bf16.msra.mxu0 %v1641_v24  ;;  %v2220_v24 = vstv %s814_s24 }
  0xcc   : > { %1445 = vmatprep.subr.bf16.mxu0 %v1642_v25 }
  0xcf   : > { %1446 = vmatpush3.bf16.msra.mxu0 %v1642_v25 }
  0xd0   : > { %1447 = vmatprep.subr.bf16.mxu0 %v1643_v26 }
  0xd3   : > { %1448 = vmatpush3.bf16.msra.mxu0 %v1643_v26 }
  0xd4   : > { %1449 = vmatprep.subr.bf16.mxu0 %v1644_v27 }
  0xd7   : > { %1450 = vmatpush3.bf16.msra.mxu0 %v1644_v27 }
  0xd8   : > { %1499 = vmatprep.subr.bf16.mxu0 %v1940_v17 }
  0xda   : > { %1452 = vmatmul.mubr.bf16.vlgmr.msra.gmra.mxu0 %v472_v32 }
  0xdb   : > { %1455 = vmatprep.mubr.bf16.mxu0 %v473_v33 }
  0xe2   : > { %1456 = vmatmul.mubr.bf16.gmra.mxu0 %v474_v38 }
  0xe3   : > { %1459 = vmatprep.mubr.bf16.mxu0 %v475_v39 }
  0xea   : > { %1460 = vmatmul.mubr.bf16.gmra.mxu0 %v476_v44 }
  0xeb   : > { %1463 = vmatprep.mubr.bf16.mxu0 %v477_v45 }
  0xf2   : > { %1464 = vmatmul.mubr.bf16.gmra.mxu0 %v478_v48 }
  0xf3   : > { %1515 = vmatprep.mubr.msk.bf16.mxu0 %vm1941_vm0, %v1940_v17 }
 0x19a   : > { %v1453_v50 = vpop.f32.mrf.mxu0 }
 0x19c   : > { %v577_v51 = vpop.f32.mrf.mxu0 }
 0x19e   : > { %v1454_v52 = vpop.f32.mrf.mxu0 }
 0x19f   : > { %v658_v8 = vpack.c.bf16 %v1454_v52, %v1453_v50 }
 0x1a0   : > { %v580_v53 = vpop.f32.mrf.mxu0 }
 0x1a1   : > { %v657_v9 = vpack.c.bf16 %v580_v53, %v577_v51 }
 0x1a2   : > { %v1457_v54 = vpop.f32.mrf.mxu0 }
 0x1a4   : > { %v593_v55 = vpop.f32.mrf.mxu0 }
 0x1a6   : > { %v1458_v56 = vpop.f32.mrf.mxu0 }
 0x1a7   : > { %v660_v6 = vpack.c.bf16 %v1458_v56, %v1457_v54 }
 0x1a8   : > { %v596_v57 = vpop.f32.mrf.mxu0 }
 0x1a9   : > { %v659_v7 = vpack.c.bf16 %v596_v57, %v593_v55 }
 0x1aa   : > { %v1461_v58 = vpop.f32.mrf.mxu0 }
 0x1ac   : > { %v609_v59 = vpop.f32.mrf.mxu0 }
 0x1ae   : > { %v1462_v60 = vpop.f32.mrf.mxu0 }
 0x1af   : > { %v662_v4 = vpack.c.bf16 %v1462_v60, %v1461_v58 }
 0x1b0   : > { %v612_v61 = vpop.f32.mrf.mxu0 }
 0x1b1   : > { %v661_v5 = vpack.c.bf16 %v612_v61, %v609_v59 }
 0x1b2   : > { %v1465_v62 = vpop.f32.mrf.mxu0 }
 0x1b4   : > { %v625_v63 = vpop.f32.mrf.mxu0 }
 0x1b6   : > { %v1466_v0 = vpop.f32.mrf.mxu0 }
 0x1b7   : > { %v664_v1 = vpack.c.bf16 %v1466_v0, %v1465_v62 }
 0x1b8   : > { %v628_v2 = vpop.f32.mrf.mxu0 }
 0x1b9   : > { %v663_v3 = vpack.c.bf16 %v628_v2, %v625_v63  ;;  %1467 = vmatprep.subr.bf16.mxu1 %v664_v1 }
 0x1ba   : > { %1468 = vmatpush3.bf16.msra.mxu1 %v664_v1 }
 0x1bb   : > { %1469 = vmatprep.subr.bf16.mxu1 %v663_v3 }
 0x1be   : > { %1470 = vmatpush3.bf16.msra.mxu1 %v663_v3 }
 0x1bf   : > { %1471 = vmatprep.subr.bf16.mxu1 %v662_v4 }
 0x1c2   : > { %1472 = vmatpush3.bf16.msra.mxu1 %v662_v4 }
 0x1c3   : > { %1473 = vmatprep.subr.bf16.mxu1 %v661_v5 }
 0x1c6   : > { %1474 = vmatpush3.bf16.msra.mxu1 %v661_v5 }
 0x1c7   : > { %1475 = vmatprep.subr.bf16.mxu1 %v660_v6 }
 0x1ca   : > { %1476 = vmatpush3.bf16.msra.mxu1 %v660_v6  ;;  %v1025_v6 = vsub.s32 1, %v2209_v19 }
 0x1cb   : > { %1477 = vmatprep.subr.bf16.mxu1 %v659_v7 }
 0x1ce   : > { %1478 = vmatpush3.bf16.msra.mxu1 %v659_v7  ;;  %v1045_v7 = vsub.s32 2, %v2209_v19 }
 0x1cf   : > { %1479 = vmatprep.subr.bf16.mxu1 %v658_v8 }
 0x1d2   : > { %1480 = vmatpush3.bf16.msra.mxu1 %v658_v8 }
 0x1d3   : > { %1481 = vmatprep.subr.bf16.mxu1 %v657_v9 }
 0x1d6   : > { %1482 = vmatpush3.bf16.msra.mxu1 %v657_v9 }
 0x1d9   : > { %1484 = vmatmul.mubr.bf16.vlgmr.msra.gmra.mxu1 %v1646_v10 }
 0x1da   : > { %1487 = vmatprep.mubr.bf16.mxu1 %v1647_v11 }
 0x1e1   : > { %1488 = vmatmul.mubr.bf16.gmra.mxu1 %v1648_v12 }
 0x1e2   : > { %1491 = vmatprep.mubr.bf16.mxu1 %v1649_v13 }
 0x1e9   : > { %1492 = vmatmul.mubr.bf16.gmra.mxu1 %v1650_v14  ;;  %v2254_v14 = vrot.slane %v2215_v21, %v1025_v6 }
 0x1ea   : > { %1495 = vmatprep.mubr.bf16.mxu1 %v1651_v15  ;;  %v2257_v15 = vrot.slane %v2215_v21, %v1045_v7 }
 0x1f1   : > { %1496 = vmatmul.mubr.bf16.gmra.mxu1 %v1652_v16 }
 0x299   : > { %v1485_v23 = vpop.f32.mrf.mxu1 }
 0x29a   : > { %v760_v25 = vadd.f32 %v1485_v23, %v2218_v22 }
 0x29b   : > { %v751_v26 = vpop.f32.mrf.mxu1 }
 0x29c   : > { %vm817_vm1 = vcmp.gt.f32.partialorder %v760_v25, 0.0  ;;  %v834_v27 = vmul.f32 %v2220_v24, %v760_v25  ;;  %v752_v28 = vadd.f32 %v751_v26, %v2218_v22 }
 0x29d   : > { %v1486_v29 = vpop.f32.mrf.mxu1 }
 0x29e   : > { %v2225_v30 = vsel %vm817_vm1, %v760_v25, %v834_v27  ;;  %v763_v31 = vadd.f32 %v1486_v29, %v2218_v22  ;;  %v832_v33 = vmul.f32 %v2220_v24, %v752_v28  ;;  %vm815_vm3 = vcmp.gt.f32.partialorder %v752_v28, 0.0 }
 0x29f   : > { %v754_v32 = vpop.f32.mrf.mxu1 }
 0x2a0   : > { %vm818_vm2 = vcmp.gt.f32.partialorder %v763_v31, 0.0  ;;  %v835_v34 = vmul.f32 %v2220_v24, %v763_v31  ;;  %v755_v35 = vadd.f32 %v754_v32, %v2218_v22  ;;  %v848_v39 = vsel %vm815_vm3, %v752_v28, %v832_v33 }
 0x2a1   : > { %v1489_v36 = vpop.f32.mrf.mxu1 }
 0x2a2   : > { %v2231_v37 = vsel %vm818_vm2, %v763_v31, %v835_v34  ;;  %vm816_vm4 = vcmp.gt.f32.partialorder %v755_v35, 0.0  ;;  %v833_v38 = vmul.f32 %v2220_v24, %v755_v35  ;;  %v776_v3 = vadd.f32 %v1489_v36, %v2218_v22 }
 0x2a3   : > { %v767_v42 = vpop.f32.mrf.mxu1 }
 0x2a4   : > { %v849_v40 = vsel %vm816_vm4, %v755_v35, %v833_v38  ;;  %v838_v9 = vmul.f32 %v2220_v24, %v776_v3  ;;  %vm821_vm5 = vcmp.gt.f32.partialorder %v776_v3, 0.0  ;;  %v768_v11 = vadd.f32 %v767_v42, %v2218_v22 }
 0x2a5   : > { %v913_v41 = vadd.f32 %v849_v40, %v848_v39  ;;  %v1490_v45 = vpop.f32.mrf.mxu1 }
 0x2a6   : > { %v779_v12 = vadd.f32 %v1490_v45, %v2218_v22  ;;  %v854_v23 = vsel %vm821_vm5, %v776_v3, %v838_v9  ;;  %vm819_vm6 = vcmp.gt.f32.partialorder %v768_v11, 0.0  ;;  %v836_v21 = vmul.f32 %v2220_v24, %v768_v11 }
 0x2a7   : > { %v928_v43 = vrot.slane %v913_v41, 4  ;;  %v770_v48 = vpop.f32.mrf.mxu1 }
 0x2a8   : > { %v771_v16 = vadd.f32 %v770_v48, %v2218_v22  ;;  %vm822_vm7 = vcmp.gt.f32.partialorder %v779_v12, 0.0  ;;  %v839_v31 = vmul.f32 %v2220_v24, %v779_v12  ;;  %v852_v42 = vsel %vm819_vm6, %v768_v11, %v836_v21 }
 0x2a9   : > { %v929_v44 = vadd.f32 %v928_v43, %v913_v41  ;;  %v1493_v51 = vpop.f32.mrf.mxu1 }
 0x2aa   : > { %v792_v18 = vadd.f32 %v1493_v51, %v2218_v22  ;;  %vm820_vm8 = vcmp.gt.f32.partialorder %v771_v16, 0.0  ;;  %v837_v32 = vmul.f32 %v2220_v24, %v771_v16  ;;  %v855_v43 = vsel %vm822_vm7, %v779_v12, %v839_v31 }
 0x2ab   : > { %v930_v46 = vrot.slane %v929_v44, 2  ;;  %v783_v55 = vpop.f32.mrf.mxu1 }
 0x2ac   : > { %v784_v19 = vadd.f32 %v783_v55, %v2218_v22  ;;  %vm825_vm9 = vcmp.gt.f32.partialorder %v792_v18, 0.0  ;;  %v842_v34 = vmul.f32 %v2220_v24, %v792_v18  ;;  %v853_v45 = vsel %vm820_vm8, %v771_v16, %v837_v32 }
 0x2ad   : > { %v931_v47 = vadd.f32 %v930_v46, %v929_v44  ;;  %v1494_v59 = vpop.f32.mrf.mxu1 }
 0x2ae   : > { %v795_v25 = vadd.f32 %v1494_v59, %v2218_v22  ;;  %vm823_vm10 = vcmp.gt.f32.partialorder %v784_v19, 0.0  ;;  %v840_v35 = vmul.f32 %v2220_v24, %v784_v19  ;;  %v858_v46 = vsel %vm825_vm9, %v792_v18, %v842_v34 }
 0x2af   : > { %v932_v49 = vrot.slane %v931_v47, 1  ;;  %v786_v62 = vpop.f32.mrf.mxu1 }
 0x2b0   : > { %v787_v26 = vadd.f32 %v786_v62, %v2218_v22  ;;  %v843_v36 = vmul.f32 %v2220_v24, %v795_v25  ;;  %vm826_vm11 = vcmp.gt.f32.partialorder %v795_v25, 0.0 }
 0x2b1   : > { %v933_v50 = vadd.f32 %v932_v49, %v931_v47  ;;  %v1497_v1 = vpop.f32.mrf.mxu1  ;;  %v856_v47 = vsel %vm823_vm10, %v784_v19, %v840_v35 }
 0x2b2   : > { %v808_v27 = vadd.f32 %v1497_v1, %v2218_v22  ;;  %v841_v38 = vmul.f32 %v2220_v24, %v787_v26  ;;  %vm824_vm12 = vcmp.gt.f32.partialorder %v787_v26, 0.0 }
 0x2b3   : > { %v2234_v52 = vmul.f32 0.0625, %v933_v50  ;;  %v799_v5 = vpop.f32.mrf.mxu1 }
 0x2b4   : > { %v800_v28 = vadd.f32 %v799_v5, %v2218_v22  ;;  %vm829_vm13 = vcmp.gt.f32.partialorder %v808_v27, 0.0  ;;  %v857_v48 = vsel %vm824_vm12, %v787_v26, %v841_v38 }
 0x2b5   : > { %v2237_v53 = vsub.f32 %v848_v39, %v2234_v52  ;;  %v2240_v54 = vsub.f32 %v849_v40, %v2234_v52  ;;  %v1498_v13 = vpop.f32.mrf.mxu1  ;;  %v846_v39 = vmul.f32 %v2220_v24, %v808_v27  ;;  %v941_v51 = vsub.f32 %v854_v23, %v2234_v52 }
 0x2b6   : > { %v811_v33 = vadd.f32 %v1498_v13, %v2218_v22  ;;  %v844_v41 = vmul.f32 %v2220_v24, %v800_v28  ;;  %vm827_vm14 = vcmp.gt.f32.partialorder %v800_v28, 0.0  ;;  %v939_v55 = vsub.f32 %v852_v42, %v2234_v52 }
 0x2b7   : > { %v967_v56 = vmul.f32 %v2237_v53, %v2237_v53  ;;  %v968_v57 = vmul.f32 %v2240_v54, %v2240_v54  ;;  %v802_v29 = vpop.f32.mrf.mxu1  ;;  %v862_v49 = vsel %vm829_vm13, %v808_v27, %v846_v39  ;;  %v945_v59 = vsub.f32 %v858_v46, %v2234_v52 }
 0x2b8   : > { %v803_v40 = vadd.f32 %v802_v29, %v2218_v22  ;;  %v847_v44 = vmul.f32 %v2220_v24, %v811_v33  ;;  %vm830_vm15 = vcmp.gt.f32.partialorder %v811_v33, 0.0  ;;  %v859_v22 = vsel %vm826_vm11, %v795_v25, %v843_v36 }
 0x2b9   : > { %v983_v58 = vadd.f32 %v968_v57, %v967_v56  ;;  %v860_v56 = vsel %vm827_vm14, %v800_v28, %v844_v41  ;;  %v942_v57 = vsub.f32 %v855_v43, %v2234_v52  ;;  %v946_v62 = vsub.f32 %v859_v22, %v2234_v52 }
 0x2ba   : > { %v845_v50 = vmul.f32 %v2220_v24, %v803_v40  ;;  %vm828_vm0 = vcmp.gt.f32.partialorder %v803_v40, 0.0  ;;  %v949_v24 = vsub.f32 %v862_v49, %v2234_v52  ;;  %v947_v1 = vsub.f32 %v860_v56, %v2234_v52 }
 0x2bb   : > { %v998_v60 = vrot.slane %v983_v58, 4  ;;  %v937_v3 = vsub.f32 %v2225_v30, %v2234_v52 }
 0x2bd   : > { %v999_v61 = vadd.f32 %v998_v60, %v983_v58  ;;  %v940_v58 = vsub.f32 %v853_v45, %v2234_v52  ;;  %v863_v60 = vsel %vm830_vm15, %v811_v33, %v847_v44 }
 0x2bf   : > { %v1000_v63 = vrot.slane %v999_v61, 2 }
 0x2c1   : > { %v1001_v0 = vadd.f32 %v1000_v63, %v999_v61  ;;  %v943_v61 = vsub.f32 %v856_v47, %v2234_v52  ;;  %v944_v63 = vsub.f32 %v857_v48, %v2234_v52 }
 0x2c3   : > { %v1002_v2 = vrot.slane %v1001_v0, 1 }
 0x2c5   : > { %v1003_v4 = vadd.f32 %v1002_v2, %v1001_v0  ;;  %v861_v2 = vsel %vm828_vm0, %v803_v40, %v845_v50 }
 0x2c6   : > { %v948_v18 = vsub.f32 %v861_v2, %v2234_v52 }
 0x2c7   : > { %v1004_v8 = vmul.f32 0.0625, %v1003_v4  ;;  %v938_v4 = vsub.f32 %v2231_v37, %v2234_v52 }
 0x2c9   : > { %v1005_v10 = vadd.f32 1e-05, %v1004_v8  ;;  %v950_v8 = vsub.f32 %v863_v60, %v2234_v52 }
 0x2cb   : > { %1654 = vrsqrt.f32 %v1005_v10 }
 0x2d8   : > { %v2295_v0 = vpop.eup %1654 }
 0x2d9   : > { %v1008_v5 = vmul.f32 %v2295_v0, %v2240_v54  ;;  %v1013_v6 = vmul.f32 %v2295_v0, %v941_v51  ;;  %v1011_v7 = vmul.f32 %v2295_v0, %v939_v55  ;;  %v1014_v9 = vmul.f32 %v2295_v0, %v942_v57 }
 0x2da   : > { %v1012_v10 = vmul.f32 %v2295_v0, %v940_v58  ;;  %v1017_v11 = vmul.f32 %v2295_v0, %v945_v59  ;;  %v1015_v12 = vmul.f32 %v2295_v0, %v943_v61  ;;  %v1018_v54 = vmul.f32 %v2295_v0, %v946_v62 }
 0x2db   : > { %v1033_v13 = vmul.f32 %v2254_v14, %v1013_v6  ;;  %v1031_v16 = vmul.f32 %v2254_v14, %v1011_v7  ;;  %v2317_v19 = vmul.f32 %v2295_v0, %v2237_v53  ;;  %v1034_v23 = vmul.f32 %v2254_v14, %v1014_v9 }
 0x2dc   : > { %v1037_v25 = vmul.f32 %v2254_v14, %v1017_v11  ;;  %v1035_v26 = vmul.f32 %v2254_v14, %v1015_v12  ;;  %v1028_v27 = vmul.f32 %v2254_v14, %v1008_v5  ;;  %v1032_v28 = vmul.f32 %v2254_v14, %v1012_v10 }
 0x2dd   : > { %v2324_v21 = vadd.f32 %v2257_v15, %v1033_v13  ;;  %v1038_v29 = vmul.f32 %v2254_v14, %v1018_v54  ;;  %v2329_v31 = vadd.f32 %v2257_v15, %v1031_v16  ;;  %v2332_v53 = vadd.f32 %v2257_v15, %v1034_v23 }
 0x2de   : > { %v1057_v32 = vadd.f32 %v2257_v15, %v1037_v25  ;;  %v1055_v33 = vadd.f32 %v2257_v15, %v1035_v26  ;;  %v1016_v35 = vmul.f32 %v2295_v0, %v944_v63  ;;  %v1021_v36 = vmul.f32 %v2295_v0, %v949_v24 }
 0x2df   : > { %v1058_v34 = vadd.f32 %v2257_v15, %v1038_v29  ;;  %v1019_v38 = vmul.f32 %v2295_v0, %v947_v1  ;;  %v1022_v39 = vmul.f32 %v2295_v0, %v950_v8  ;;  %v1020_v40 = vmul.f32 %v2295_v0, %v948_v18 }
 0x2e0   : > { %vm1074_vm1 = vcmp.gt.f32.partialorder %v1057_v32, 0.0  ;;  %v1091_v41 = vmul.f32 %v2262_v20, %v1057_v32  ;;  %v1036_v42 = vmul.f32 %v2254_v14, %v1016_v35  ;;  %v1041_v43 = vmul.f32 %v2254_v14, %v1021_v36 }
 0x2e1   : > { %v1039_v44 = vmul.f32 %v2254_v14, %v1019_v38  ;;  %vm1075_vm2 = vcmp.gt.f32.partialorder %v1058_v34, 0.0  ;;  %v1042_v45 = vmul.f32 %v2254_v14, %v1022_v39  ;;  %v1040_v46 = vmul.f32 %v2254_v14, %v1020_v40  ;;  %v1653_v38 = vld [vmem:[#allocation8] sm:$0xff]  }
 0x2e2   : > { %v1092_v47 = vmul.f32 %v2262_v20, %v1058_v34  ;;  %v2349_v22 = vsel %vm1074_vm1, %v1057_v32, %v1091_v41  ;;  %v1056_v48 = vadd.f32 %v2257_v15, %v1036_v42  ;;  %v1061_v49 = vadd.f32 %v2257_v15, %v1041_v43 }
 0x2e3   : > { %v1059_v50 = vadd.f32 %v2257_v15, %v1039_v44  ;;  %1123 = vst [vmem:[#allocation15 + $0x50] sm:$0xff] %v2349_v22  ;;  %vm1072_vm3 = vcmp.gt.f32.partialorder %v1055_v33, 0.0  ;;  %v1062_v51 = vadd.f32 %v2257_v15, %v1042_v45  ;;  %v1060_v55 = vadd.f32 %v2257_v15, %v1040_v46 }
 0x2e4   : > { %v2357_v56 = vsel %vm1075_vm2, %v1058_v34, %v1092_v47  ;;  %v1089_v57 = vmul.f32 %v2262_v20, %v1055_v33  ;;  %vm1078_vm4 = vcmp.gt.f32.partialorder %v1061_v49, 0.0  ;;  %v1095_v58 = vmul.f32 %v2262_v20, %v1061_v49 }
 0x2e5   : > { %vm1076_vm5 = vcmp.gt.f32.partialorder %v1059_v50, 0.0  ;;  %v1093_v59 = vmul.f32 %v2262_v20, %v1059_v50  ;;  %1124 = vst [vmem:[#allocation15 + $0x58] sm:$0xff] %v2357_v56  ;;  %vm1079_vm6 = vcmp.gt.f32.partialorder %v1062_v51, 0.0  ;;  %v1096_v60 = vmul.f32 %v2262_v20, %v1062_v51 }
 0x2e6   : > { %vm1077_vm7 = vcmp.gt.f32.partialorder %v1060_v55, 0.0  ;;  %v1094_v61 = vmul.f32 %v2262_v20, %v1060_v55  ;;  %v1052_v62 = vadd.f32 %v2257_v15, %v1032_v28  ;;  %v1111_v63 = vsel %vm1078_vm4, %v1061_v49, %v1095_v58 }
 0x2e7   : > { %v1109_v24 = vsel %vm1076_vm5, %v1059_v50, %v1093_v59  ;;  %vm1073_vm8 = vcmp.gt.f32.partialorder %v1056_v48, 0.0  ;;  %v1112_v1 = vsel %vm1079_vm6, %v1062_v51, %v1096_v60  ;;  %1127 = vst [vmem:[#allocation15 + $0x70] sm:$0xff] %v1111_v63  ;;  %v1090_v5 = vmul.f32 %v2262_v20, %v1056_v48 }
 0x2e8   : > { %v1110_v2 = vsel %vm1077_vm7, %v1060_v55, %v1094_v61  ;;  %1125 = vst [vmem:[#allocation15 + $0x60] sm:$0xff] %v1109_v24  ;;  %v1105_v6 = vsel %vm1072_vm3, %v1055_v33, %v1089_v57  ;;  %v1048_v7 = vadd.f32 %v2257_v15, %v1028_v27  ;;  %1128 = vst [vmem:[#allocation15 + $0x78] sm:$0xff] %v1112_v1  ;;  %vm1070_vm9 = vcmp.gt.f32.partialorder %v2324_v21, 0.0 }
 0x2e9   : > { %v1140_v8 = vpack.c.bf16 %v1112_v1, %v1111_v63  ;;  %1126 = vst [vmem:[#allocation15 + $0x68] sm:$0xff] %v1110_v2  ;;  %1121 = vst [vmem:[#allocation15 + $0x40] sm:$0xff] %v1105_v6  ;;  %vm1071_vm10 = vcmp.gt.f32.partialorder %v2332_v53, 0.0  ;;  %v1106_v9 = vsel %vm1073_vm8, %v1056_v48, %v1090_v5  ;;  %v1087_v10 = vmul.f32 %v2262_v20, %v2324_v21 }
 0x2ea   : > { %v1088_v11 = vmul.f32 %v2262_v20, %v2332_v53  ;;  %vm1068_vm11 = vcmp.gt.f32.partialorder %v2329_v31, 0.0  ;;  %1122 = vst [vmem:[#allocation15 + $0x48] sm:$0xff] %v1106_v9  ;;  %vm1069_vm12 = vcmp.gt.f32.partialorder %v1052_v62, 0.0  ;;  %v1085_v12 = vmul.f32 %v2262_v20, %v2329_v31 }
 0x2eb   : > { %1500 = vmatpush3.bf16.msra.mxu0 %v1140_v8  ;;  %v1086_v13 = vmul.f32 %v2262_v20, %v1052_v62  ;;  %v1103_v16 = vsel %vm1070_vm9, %v2324_v21, %v1087_v10  ;;  %v1009_v18 = vmul.f32 %v2295_v0, %v937_v3  ;;  %v1010_v23 = vmul.f32 %v2295_v0, %v938_v4 }
 0x2ec   : > { %1501 = vmatprep.subr.bf16.mxu0 %v1940_v17  ;;  %v1104_v54 = vsel %vm1071_vm10, %v2332_v53, %v1088_v11  ;;  %v1139_v25 = vpack.c.bf16 %v1110_v2, %v1109_v24  ;;  %1119 = vst [vmem:[#allocation15 + $0x30] sm:$0xff] %v1103_v16  ;;  %v1101_v26 = vsel %vm1068_vm11, %v2329_v31, %v1085_v12  ;;  %vm1065_vm13 = vcmp.gt.f32.partialorder %v1048_v7, 0.0 }
 0x2ed   : > { %1120 = vst [vmem:[#allocation15 + $0x38] sm:$0xff] %v1104_v54  ;;  %v1102_v27 = vsel %vm1069_vm12, %v1052_v62, %v1086_v13  ;;  %v1027_v21 = vmul.f32 %v2254_v14, %v2317_v19  ;;  %1117 = vst [vmem:[#allocation15 + $0x20] sm:$0xff] %v1101_v26  ;;  %v1029_v30 = vmul.f32 %v2254_v14, %v1009_v18 }
 0x2ee   : > { %1118 = vst [vmem:[#allocation15 + $0x28] sm:$0xff] %v1102_v27  ;;  %v1030_v3 = vmul.f32 %v2254_v14, %v1010_v23  ;;  %v1082_v52 = vmul.f32 %v2262_v20, %v1048_v7  ;;  %v1138_v19 = vpack.c.bf16 %v2357_v56, %v2349_v22  ;;  %v1137_v33 = vpack.c.bf16 %v1106_v9, %v1105_v6 }
 0x2ef   : > { %1502 = vmatpush3.bf16.msra.mxu0 %v1139_v25  ;;  %v1047_v37 = vadd.f32 %v2257_v15, %v1027_v21  ;;  %v1049_v0 = vadd.f32 %v2257_v15, %v1029_v30  ;;  %v1136_v35 = vpack.c.bf16 %v1104_v54, %v1103_v16 }
 0x2f0   : > { %1503 = vmatprep.subr.bf16.mxu0 %v1940_v17  ;;  %v1050_v4 = vadd.f32 %v2257_v15, %v1030_v3  ;;  %v1098_v29 = vsel %vm1065_vm13, %v1048_v7, %v1082_v52 }
 0x2f1   : > { %vm1064_vm14 = vcmp.gt.f32.partialorder %v1047_v37, 0.0  ;;  %v1081_v28 = vmul.f32 %v2262_v20, %v1047_v37  ;;  %vm1066_vm15 = vcmp.gt.f32.partialorder %v1049_v0, 0.0  ;;  %v1083_v14 = vmul.f32 %v2262_v20, %v1049_v0  ;;  %1114 = vst [vmem:[#allocation15 + $0x8] sm:$0xff] %v1098_v29 }
 0x2f2   : > { %vm1067_vm0 = vcmp.gt.f32.partialorder %v1050_v4, 0.0  ;;  %v1084_v31 = vmul.f32 %v2262_v20, %v1050_v4  ;;  %v1135_v20 = vpack.c.bf16 %v1102_v27, %v1101_v26 }
 0x2f3   : > { %1504 = vmatpush3.bf16.msra.mxu0 %v1138_v19  ;;  %v1097_v53 = vsel %vm1064_vm14, %v1047_v37, %v1081_v28  ;;  %v1099_v32 = vsel %vm1066_vm15, %v1049_v0, %v1083_v14 }
 0x2f4   : > { %1505 = vmatprep.subr.bf16.mxu0 %v1940_v17  ;;  %v1100_v15 = vsel %vm1067_vm0, %v1050_v4, %v1084_v31  ;;  %1113 = vst [vmem:[#allocation15] sm:$0xff] %v1097_v53  ;;  %1115 = vst [vmem:[#allocation15 + $0x10] sm:$0xff] %v1099_v32  ;;  %v1133_v36 = vpack.c.bf16 %v1098_v29, %v1097_v53 }
 0x2f5   : > { %1116 = vst [vmem:[#allocation15 + $0x18] sm:$0xff] %v1100_v15  ;;  %v1134_v34 = vpack.c.bf16 %v1100_v15, %v1099_v32 }
 0x2f7   : > { %1506 = vmatpush3.bf16.msra.mxu0 %v1137_v33 }
 0x2f8   : > { %1507 = vmatprep.subr.bf16.mxu0 %v1940_v17 }
 0x2fb   : > { %1508 = vmatpush3.bf16.msra.mxu0 %v1136_v35 }
 0x2fc   : > { %1509 = vmatprep.subr.bf16.mxu0 %v1940_v17 }
 0x2ff   : > { %1510 = vmatpush3.bf16.msra.mxu0 %v1135_v20 }
 0x300   : > { %1511 = vmatprep.subr.bf16.mxu0 %v1940_v17 }
 0x303   : > { %1512 = vmatpush3.bf16.msra.mxu0 %v1134_v34 }
 0x304   : > { %1513 = vmatprep.subr.bf16.mxu0 %v1940_v17 }
 0x307   : > { %1514 = vmatpush3.bf16.msra.mxu0 %v1133_v36 }
 0x30a   : > { %1516 = vmatmul.mubr.bf16.vlgmr.msra.gmra.mxu0 %v1653_v38 }
 0x30b   : > { %1833 = shalt.err (!%p1830_p1)
}
 0x30c   : > { %s1943_s10 = smov 128   ;;  %s1944_s19 = smov 8   ;;  %v1129_v17 = vld [vmem:[#allocation16] sm:$0xff]  ;;  %v1130_v42 = vld [vmem:[#allocation16 + $0x8] sm:$0xff] }
 0x30d   : > { %1544 = dma.vmem_to_hbm [thread:$0]  (%p1585_p7), %s1199_s1, 2048, %s2453_s7, [#allocation4], %s1943_s10, %s1943_s10, %s1944_s19  }
 0x30e   : > { %s1945_s22 = smov [#allocation16]  }
 0x30f   : > { %s1211_s27 = sshll.u32 %s1945_s22, 4  ;;  %s1212_s27 = int_to_ptr.vmem [resolvable:$true] %s1211_s27 }
 0x310   : > { %s1844_s20 = scalar_lea.vmem %s1212_s27, 256  ;;  %p1851_p6 = scmp.lt.s32.totalorder %s1212_s27, %s1212_s27 }
 0x311   : > { %p1845_p13 = scmp.ne.s32.totalorder %s1212_s27, %s1844_s20  ;;  %p1852_p11 = scmp.lt.s32.totalorder %s1844_s20, %s1844_s20 }
 0x313   : > { %p1846_p3 = pnand %p1845_p13, %p1585_p7  ;;  %p1853_p8 = por %p1852_p11, %p1851_p6 }
 0x315   : > { %p1847_p4 = pneg %p1846_p3 }
 0x317   : > { %p1854_p2 = pnand %p1853_p8, %p1847_p4 }
 0x3ca   : > { %v1181_v39 = vpop.f32.mrf.mxu0 }
 0x3cb   : > { %v1188_v40 = vadd.f32 %v1181_v39, %v1129_v17 }
 0x3cc   : > { %v1517_v41 = vpop.f32.mrf.mxu0 }
 0x3cd   : > { %1190 = vst [vmem:[#allocation16] sm:$0xff] %v1188_v40 }
 0x3ce   : > { %v1184_v43 = vpop.f32.mrf.mxu0 }
 0x3cf   : > { %v1189_v44 = vadd.f32 %v1184_v43, %v1130_v42 }
 0x3d0   : > { %v1518_v45 = vpop.f32.mrf.mxu0 }
 0x3d1   : > { %1191 = vst [vmem:[#allocation16 + $0x8] sm:$0xff] %v1189_v44 }
 0x3d2   : > { %1857 = shalt.err (!%p1854_p2)
}
 0x3d3   : > { %1546 = dma.vmem_to_hbm [thread:$0]  (%p1585_p7), %s1212_s27, 256, %s2454_s8, [#allocation17], %s1943_s10, %s1943_s10, %s1944_s19  }
 0x3d4   : > { %1905 = dma.done.wait (%p1585_p7), [#allocation4], 2048  }
 0x3d5   : > { %1907 = vsyncadd (%p1585_p7), [#allocation4], 4294965248 }
 0x3d6   : > { %1909 = dma.done.wait (%p1585_p7), [#allocation17], 256  }
 0x3d7   : > { %1911 = vsyncadd (%p1585_p7), [#allocation17], 4294967040 }
 0x3d8 PF: > { %p25_p10 = scmp.ge.s32.totalorder %s2031_s14, 4   ;;  %s2487_s27 = smov %s1918_s28 }
 0x3d9   : > { %s2488_s28 = smov %s1922_s29  ;;  %s2489_s29 = smov %s2055_s23 }
 0x3da   : > { %s2490_s30 = smov %s2031_s14  ;;  %27 = sbr.rel (!%p25_p10) target bundleno = 11 (0xb), region = 130 }
 0x3df   :  { %1231 = vsyncpa [#allocation3], 1 }
 0x3e0   :  { %1233 = vsyncpa [#allocation3 + $0x1], 1 }
 0x3e1   :  { %1234 = vsyncpa [#allocation7], 1 }
 0x3e2   :  { %1235 = vsyncpa [#allocation10], 1 }
 0x3e3   :  { %1237 = vsyncpa [#allocation10 + $0x1], 1 }
 0x3e4   :  { %1238 = vsyncpa [#allocation4], 1 }
 0x3e5   :  { %1240 = vsyncpa [#allocation4 + $0x1], 1 }
 0x3e6   :  { %1241 = vsyncpa [#allocation17], 1 }
 0x3e7   :  { %1242 = vsyncpa [#allocation5], 1 }
 0x3e8   :  { %1244 = vsyncpa [#allocation5 + $0x1], 1 }
 0x3e9   :  { %1245 = vsyncpa [#allocation14], 1 }

</bundles_post_ra>
